<compile_context>
chip_gen: v7x
topology: tpu7x:2x2x1
jax: 0.10.0
libtpu: 0.0.40
codegen_flags: <defaults>
</compile_context>

<pallas_src>
import jax
import jax.numpy as jnp
from jax import lax
from jax.experimental import pallas as pl
from jax.experimental.pallas import tpu as pltpu


def _sublane_group(dtype) -> int:
    """Rows per packed sublane group: 8 for 32-bit, 16 for bf16, 32 for int8/fp8."""
    return max(8, 32 // jnp.dtype(dtype).itemsize)


def _make_gather_kernel(group: int):
    """Gather kernel: for each kept slot, copy one token row from the resident batch
    tile into the output block, grouped so every store is a dense sublane-group."""

    def kernel(idx_ref, x_ref, o_ref):
        # idx_ref : SMEM int32 (n_keep_padded,) -- original token index per kept slot
        # x_ref   : VMEM (bb, N, D)             -- batch tile, resident across token axis
        # o_ref   : VMEM (bb, T, D)             -- auto-pipelined output block
        T = o_ref.shape[1]
        n_groups = T // group
        base = pl.program_id(1) * T

        def body(g, carry):
            off = pl.multiple_of(g * group, group)
            # `group` dynamic single-row loads (cheap vld slots), one dense store.
            rows = [x_ref[:, pl.ds(idx_ref[base + off + r], 1), :]
                    for r in range(group)]
            o_ref[:, pl.ds(off, group), :] = jnp.concatenate(rows, axis=1)
            return carry

        lax.fori_loop(0, n_groups, body, 0, unroll=(n_groups <= 8))

    return kernel


def _pick_tiles(B, N, D, n_keep, itemsize, group,
                batch_tile=None, tokens_per_step=None,
                in_budget_bytes=16 << 20, out_budget_bytes=8 << 20):
    """Pick (batch_tile, token_tile, padded_keep_count) under an explicit VMEM budget."""
    # Batch tile: largest divisor of B whose double-buffered (bb, N, D) input block
    # fits the input budget.
    if batch_tile is None:
        cap = max(1, in_budget_bytes // (2 * N * D * itemsize))
        bb = 1
        for cand in range(1, B + 1):
            if B % cand == 0 and cand <= cap:
                bb = cand
        # TODO(synk): if even bb == 1 exceeds the budget (huge N*D), also tile the
        # token dimension of the *input* block instead of keeping the full extent.
    else:
        bb = batch_tile
        assert B % bb == 0, "batch_tile must divide the batch size"

    # Token tile: multiple of the dtype sublane group, sized from the output budget,
    # never larger than the (group-padded) kept-token count.
    if tokens_per_step is None:
        cap = max(group,
                  (out_budget_bytes // (2 * bb * D * itemsize)) // group * group)
        T = min(cap, pl.cdiv(n_keep, group) * group)
    else:
        T = tokens_per_step
        assert T % group == 0, "tokens_per_step must be a multiple of the sublane group"

    n_keep_padded = pl.cdiv(n_keep, T) * T
    return bb, T, n_keep_padded


def patch_shuffle(x, mask_ratio, key, *, batch_tile=None, tokens_per_step=None):
    """
    x: (B, N, D). Returns (x_kept, mask): x_kept (B, n_keep, D) with kept tokens in
    original order, mask bool (N,) with True = masked out. mask_ratio must be static.
    """
    B, N, D = x.shape
    n_mask = int(N * mask_ratio)
    n_keep = N - n_mask
    assert n_mask > 0, "mask_ratio must mask at least one token"
    assert n_keep > 0, "mask_ratio must keep at least one token"

    # Permutation + mask glue stays in plain JAX (cheap, O(N) scalar work).
    shuffled = jax.random.permutation(key, N)
    mask = jnp.zeros((N,), jnp.bool_).at[shuffled[N - n_mask:]].set(True)
    # Kept tokens in ORIGINAL order == sorted first n_keep entries of the permutation.
    keep_indices = jnp.sort(shuffled[:n_keep]).astype(jnp.int32)

    itemsize = jnp.dtype(x.dtype).itemsize
    group = _sublane_group(x.dtype)
    bb, T, n_keep_p = _pick_tiles(B, N, D, n_keep, itemsize, group,
                                  batch_tile, tokens_per_step)

    # Pad the index list up to a multiple of T (padded slots gather token 0; the
    # padded output rows are sliced off below).
    pad = n_keep_p - n_keep
    if pad:
        keep_indices = jnp.concatenate(
            [keep_indices, jnp.zeros((pad,), jnp.int32)])

    grid = (B // bb, n_keep_p // T)
    # Double-buffered input + output blocks (what the auto-pipeline actually allocates).
    block_bytes = 2 * bb * (N + T) * D * itemsize

    x_kept_p = pl.pallas_call(
        _make_gather_kernel(group),
        out_shape=jax.ShapeDtypeStruct((B, n_keep_p, D), x.dtype),
        grid_spec=pltpu.PrefetchScalarGridSpec(
            num_scalar_prefetch=1,                               # keep_indices -> SMEM
            grid=grid,
            # Full-extent (N, D) batch tile; same block index across the inner token
            # axis -> fetched once per batch tile and kept resident in VMEM.
            in_specs=[pl.BlockSpec((bb, N, D), lambda b, t, idx: (b, 0, 0))],
            # Lane-dense, sublane-aligned output block.
            out_specs=pl.BlockSpec((bb, T, D), lambda b, t, idx: (b, t, 0)),
        ),
        compiler_params=pltpu.CompilerParams(
            # batch tiles can go to different TensorCores (v7x megacore); the token
            # axis reuses the resident input tile, so it stays "arbitrary".
            dimension_semantics=("parallel", "arbitrary"),
            vmem_limit_bytes=min(64 << 20, max(16 << 20, block_bytes + (8 << 20))),
        ),
        cost_estimate=pl.CostEstimate(
            flops=0, transcendentals=0,
            bytes_accessed=(B * N * D + B * n_keep_p * D) * itemsize),
    )(keep_indices, x)

    x_kept = x_kept_p[:, :n_keep, :] if pad else x_kept_p
    return x_kept, mask


def _reference(x, mask, n_keep):
    keep_idx = jnp.where(~mask, size=n_keep)[0]
    return x[:, keep_idx, :]


if __name__ == "__main__":
    key = jax.random.PRNGKey(0)
    k_x, k_p1, k_p2 = jax.random.split(key, 3)

    B, N, D = 2, 64, 128          # batch=2, 64 tokens, hidden=128 (lane-dense output)
    x = jax.random.normal(k_x, (B, N, D), dtype=jnp.float32)

    # Case 1: classic MAE ratio 0.75 (keep 16 of 64). tokens_per_step=8 forces a
    # multi-step token grid so the resident-input / pipelined-output path is exercised.
    mask_ratio = 0.75
    x_kept, mask = patch_shuffle(x, mask_ratio, k_p1, tokens_per_step=8)
    x_kept = jax.block_until_ready(x_kept)
    mask = jax.block_until_ready(mask)
    n_mask = int(N * mask_ratio)
    n_keep = N - n_mask
    assert x_kept.shape == (B, n_keep, D)
    assert mask.shape == (N,) and mask.dtype == jnp.bool_
    assert int(mask.sum()) == n_mask
    assert jnp.array_equal(x_kept, _reference(x, mask, n_keep))

    # Case 2: ratio 0.7 keeps 20 tokens (not a multiple of 8) -> exercises the padded
    # keep_indices path and the wrapper-side slice of the padded output.
    mask_ratio2 = 0.7
    x_kept2, mask2 = patch_shuffle(x, mask_ratio2, k_p2)
    x_kept2 = jax.block_until_ready(x_kept2)
    mask2 = jax.block_until_ready(mask2)
    n_mask2 = int(N * mask_ratio2)
    n_keep2 = N - n_mask2
    assert x_kept2.shape == (B, n_keep2, D)
    assert int(mask2.sum()) == n_mask2
    assert jnp.array_equal(x_kept2, _reference(x, mask2, n_keep2))

    print("KERNEL_OK")
</pallas_src>

<mosaic_0001>
module attributes {stable_mosaic.version = 11 : i64} {
  func.func @kernel(%arg0: i32, %arg1: i32, %arg2: memref<16xi32, #tpu.memory_space<smem>>, %arg3: memref<2x64x128xf32, #tpu.memory_space<vmem>>, %arg4: memref<2x8x128xf32, #tpu.memory_space<vmem>>) attributes {dimension_semantics = [#tpu.dimension_semantics<parallel>, #tpu.dimension_semantics<arbitrary>], iteration_bounds = array<i64: 1, 2>, scalar_prefetch = 1 : i64, scratch_operands = 0 : i64, tpu.core_type = #tpu.core_type<tc>, window_params = [{transform_indices = @transform_0, window_bounds = array<i64: 2, 64, 128>}, {transform_indices = @transform_1, window_bounds = array<i64: 2, 8, 128>}]} {
    %c8_i32 = arith.constant 8 : i32
    %0 = arith.muli %arg1, %c8_i32 : i32
    %c0_i32 = arith.constant 0 : i32
    %c8_i32_0 = arith.constant 8 : i32
    %1 = arith.muli %c0_i32, %c8_i32_0 : i32
    %2 = tpu.assume_multiple %1, 8 : i32
    %3 = arith.addi %0, %2 : i32
    %c0_i32_1 = arith.constant 0 : i32
    %4 = arith.addi %3, %c0_i32_1 : i32
    %5 = arith.index_cast %4 : i32 to index
    %6 = memref.load %arg2[%5] : memref<16xi32, #tpu.memory_space<smem>>
    %c0 = arith.constant 0 : index
    %7 = arith.index_cast %6 : i32 to index
    %c0_2 = arith.constant 0 : index
    %8 = vector.load %arg3[%c0, %7, %c0_2] : memref<2x64x128xf32, #tpu.memory_space<vmem>>, vector<2x1x128xf32>
    %9 = arith.addi %0, %2 : i32
    %c1_i32 = arith.constant 1 : i32
    %10 = arith.addi %9, %c1_i32 : i32
    %11 = arith.index_cast %10 : i32 to index
    %12 = memref.load %arg2[%11] : memref<16xi32, #tpu.memory_space<smem>>
    %c0_3 = arith.constant 0 : index
    %13 = arith.index_cast %12 : i32 to index
    %c0_4 = arith.constant 0 : index
    %14 = vector.load %arg3[%c0_3, %13, %c0_4] : memref<2x64x128xf32, #tpu.memory_space<vmem>>, vector<2x1x128xf32>
    %15 = arith.addi %0, %2 : i32
    %c2_i32 = arith.constant 2 : i32
    %16 = arith.addi %15, %c2_i32 : i32
    %17 = arith.index_cast %16 : i32 to index
    %18 = memref.load %arg2[%17] : memref<16xi32, #tpu.memory_space<smem>>
    %c0_5 = arith.constant 0 : index
    %19 = arith.index_cast %18 : i32 to index
    %c0_6 = arith.constant 0 : index
    %20 = vector.load %arg3[%c0_5, %19, %c0_6] : memref<2x64x128xf32, #tpu.memory_space<vmem>>, vector<2x1x128xf32>
    %21 = arith.addi %0, %2 : i32
    %c3_i32 = arith.constant 3 : i32
    %22 = arith.addi %21, %c3_i32 : i32
    %23 = arith.index_cast %22 : i32 to index
    %24 = memref.load %arg2[%23] : memref<16xi32, #tpu.memory_space<smem>>
    %c0_7 = arith.constant 0 : index
    %25 = arith.index_cast %24 : i32 to index
    %c0_8 = arith.constant 0 : index
    %26 = vector.load %arg3[%c0_7, %25, %c0_8] : memref<2x64x128xf32, #tpu.memory_space<vmem>>, vector<2x1x128xf32>
    %27 = arith.addi %0, %2 : i32
    %c4_i32 = arith.constant 4 : i32
    %28 = arith.addi %27, %c4_i32 : i32
    %29 = arith.index_cast %28 : i32 to index
    %30 = memref.load %arg2[%29] : memref<16xi32, #tpu.memory_space<smem>>
    %c0_9 = arith.constant 0 : index
    %31 = arith.index_cast %30 : i32 to index
    %c0_10 = arith.constant 0 : index
    %32 = vector.load %arg3[%c0_9, %31, %c0_10] : memref<2x64x128xf32, #tpu.memory_space<vmem>>, vector<2x1x128xf32>
    %33 = arith.addi %0, %2 : i32
    %c5_i32 = arith.constant 5 : i32
    %34 = arith.addi %33, %c5_i32 : i32
    %35 = arith.index_cast %34 : i32 to index
    %36 = memref.load %arg2[%35] : memref<16xi32, #tpu.memory_space<smem>>
    %c0_11 = arith.constant 0 : index
    %37 = arith.index_cast %36 : i32 to index
    %c0_12 = arith.constant 0 : index
    %38 = vector.load %arg3[%c0_11, %37, %c0_12] : memref<2x64x128xf32, #tpu.memory_space<vmem>>, vector<2x1x128xf32>
    %39 = arith.addi %0, %2 : i32
    %c6_i32 = arith.constant 6 : i32
    %40 = arith.addi %39, %c6_i32 : i32
    %41 = arith.index_cast %40 : i32 to index
    %42 = memref.load %arg2[%41] : memref<16xi32, #tpu.memory_space<smem>>
    %c0_13 = arith.constant 0 : index
    %43 = arith.index_cast %42 : i32 to index
    %c0_14 = arith.constant 0 : index
    %44 = vector.load %arg3[%c0_13, %43, %c0_14] : memref<2x64x128xf32, #tpu.memory_space<vmem>>, vector<2x1x128xf32>
    %45 = arith.addi %0, %2 : i32
    %c7_i32 = arith.constant 7 : i32
    %46 = arith.addi %45, %c7_i32 : i32
    %47 = arith.index_cast %46 : i32 to index
    %48 = memref.load %arg2[%47] : memref<16xi32, #tpu.memory_space<smem>>
    %c0_15 = arith.constant 0 : index
    %49 = arith.index_cast %48 : i32 to index
    %c0_16 = arith.constant 0 : index
    %50 = vector.load %arg3[%c0_15, %49, %c0_16] : memref<2x64x128xf32, #tpu.memory_space<vmem>>, vector<2x1x128xf32>
    %51 = tpu.concatenate %8, %14, %20, %26, %32, %38, %44, %50 in 1 : vector<2x1x128xf32>, vector<2x1x128xf32>, vector<2x1x128xf32>, vector<2x1x128xf32>, vector<2x1x128xf32>, vector<2x1x128xf32>, vector<2x1x128xf32>, vector<2x1x128xf32> -> vector<2x8x128xf32>
    %c0_17 = arith.constant 0 : index
    %52 = arith.index_cast %2 : i32 to index
    %c0_18 = arith.constant 0 : index
    %53 = vector.load %arg4[%c0_17, %52, %c0_18] : memref<2x8x128xf32, #tpu.memory_space<vmem>>, vector<2x8x128xf32>
    tpu.vector_store %arg4[%c0_17, %52, %c0_18], %51 {strides = array<i32>} : memref<2x8x128xf32, #tpu.memory_space<vmem>>, vector<2x8x128xf32>,
    %c1_i32_19 = arith.constant 1 : i32
    return
  }
  func.func @transform_0(%arg0: i32, %arg1: i32, %arg2: memref<16xi32, #tpu.memory_space<smem>>) -> (i32, i32, i32) {
    %c0_i32 = arith.constant 0 : i32
    %c0_i32_0 = arith.constant 0 : i32
    %c0_i32_1 = arith.constant 0 : i32
    return %arg0, %c0_i32, %c0_i32_0 : i32, i32, i32
  }
  func.func @transform_1(%arg0: i32, %arg1: i32, %arg2: memref<16xi32, #tpu.memory_space<smem>>) -> (i32, i32, i32) {
    %c0_i32 = arith.constant 0 : i32
    %c0_i32_0 = arith.constant 0 : i32
    return %arg0, %arg1, %c0_i32 : i32, i32, i32
  }
}

</mosaic_0001>

<bundles_post_ra>
// kernel: tpu_custom_call.1
= control target key start
LH: loop header
LB: loop body
LE: loop exit
PB: predicated region body
PF: predicated region fallthrough
CT: control target
= control target key end

     0   :  { %s782_s0 = inlined_call_operand.hbm [shape: s32[16], index: 0, kind: input, shape index: {}]   ;;  %s783_s1 = inlined_call_operand.hbm [shape: f32[2,64,128], index: 1, kind: input, shape index: {}]   ;;  %s784_s2 = inlined_call_operand.hbm [shape: f32[2,16,128], index: 2, kind: output, shape index: {}]  }
   0x1   :  { %s428_s11 = scalar_lea.hbm %s782_s0, 16 }
   0x2   :  { %p429_p0 = scmp.ne.s32.totalorder %s782_s0, %s428_s11  ;;  %p432_p1 = scmp.lt.u32.totalorder %s428_s11, %s782_s0 }
   0x4   :  { %p434_p2 = pnand %p432_p1, %p429_p0 }
   0x6   :  { %437 = shalt.err (!%p434_p2)  }
   0x7   :  { %s552_s16 = smov [#allocation3]  }
   0x8   :  { %8 = dma.hbm_to_smem %s782_s0, 16, %s552_s16, [#allocation2] }
   0x9   :  { %518 = dma.done.wait [#allocation2], 16 }
   0xa   :  { %519 = vsyncadd [#allocation2], 4294967280 }
   0xb   :  { %10 = sfence }
   0xc   :  { %11 = vsyncpa [#allocation5], 0 }
   0xd   :  { %12 = vsyncpa [#allocation6], 0 }
   0xe   :  { %14 = vsyncpa [#allocation6 + $0x1], 0  ;;  %s587_s19 = smov 0   ;;  %s589_s20 = smov 0  }
   0xf   :  { %s591_s21 = smov 0   ;;  %s593_s22 = smov 0  }
  0x10   :  { %s595_s23 = smov 0   ;;  %s597_s24 = smov 0  }
  0x11 LB: > { %s344_s0 = sadd.s32 4294967295, %s550_s24   ;;  %s345_s25 = sadd.s32 4294967294, %s550_s24   ;;  %s550_s24 = sphi %s597_s24, %s20_s24   ;;  %s546_s23 = sphi %s595_s23, %s802_s23   ;;  %s542_s22 = sphi %s593_s22, %s801_s22   ;;  %s538_s21 = sphi %s591_s21, %s800_s21   ;;  %s534_s20 = sphi %s589_s20, %s799_s20   ;;  %s530_s19 = sphi %s587_s19, %s798_s19  }
  0x12   : > { %s29_s26 = sadd.s32 1, %s546_s23  ;;  %s67_s27 = sadd.s32 1, %s538_s21 }
  0x13   : > { %p30_p3 = scmp.ge.s32.totalorder %s29_s26, 2  ;;  %p77_p4 = scmp.ne.s32.totalorder %s538_s21, %s534_s20 }
  0x14   : > { %p78_p5 = scmp.eq.s32.totalorder %s344_s0, 1  ;;  %p83_p6 = scmp.ne.s32.totalorder %s534_s20, %s530_s19 }
  0x15   : > { %s804_s26 = smov (%p30_p3, %s29_s26), 0  ;;  %p84_p8 = scmp.eq.s32.totalorder %s345_s25, 1 }
  0x16   : > { %p627_p7 = por %p78_p5, %p77_p4  ;;  %s63_s29 = ssub.s32 %s546_s23, %s804_s26 }
  0x17   : > { %p346_p9 = scmp.ge.s32.totalorder %s550_s24, 1  ;;  %p65_p10 = scmp.eq.s32.totalorder %s63_s29, 0 }
  0x18   : > { %s789_s28 = scalar_select %p627_p7, 1, 0 }
  0x19   : > { %p634_p11 = por %p84_p8, %p83_p6  ;;  %p91_p12 = scmp.lt.s32.totalorder %s550_s24, 3 }
  0x1a   : > { %s640_s3 = scalar_select %p65_p10, %s538_s21, %s67_s27  }
  0x1b   : > { %s790_s30 = scalar_select %p634_p11, 1, 0 }
  0x1c   : > { %p642_p13 = pnand %p346_p9, %p91_p12  ;;  %p646_p0 = scmp.eq.s32.totalorder %s344_s0, 0 }
  0x1d   : > { %s553_s6 = smov [#allocation4]   ;;  %s438_s11 = scalar_lea.hbm %s783_s1, 2048 }
  0x1e   : > { %s791_s4 = scalar_select %p642_p13, 1, 0 }
  0x1f   : > { %s792_s5 = scalar_select %p646_p0, 1, 0 }
  0x20   : > { %p362_p1 = pneg %p642_p13  ;;  %s107_s7 = sshll.u32 %s553_s6, 4  ;;  %s108_s7 = int_to_ptr.vmem [resolvable:$true] %s107_s7 }
  0x21   : > { %p439_p3 = scmp.ne.s32.totalorder %s783_s1, %s438_s11  ;;  %p445_p8 = scmp.lt.u32.totalorder %s438_s11, %s783_s1 }
  0x22   : > { %p654_p2 = pnand %p646_p0, %p362_p1 }
  0x24   : > { %p440_p4 = pneg %p654_p2 }
  0x26   : > { %p441_p5 = pnand %p440_p4, %p439_p3 }
  0x28   : > { %p442_p6 = pneg %p441_p5 }
  0x2a   : > { %p447_p9 = pnand %p445_p8, %p442_p6 }
  0x2c   : > { %450 = shalt.err (!%p447_p9)
}
  0x2d   : > { %s451_s16 = scalar_lea.vmem %s108_s7, 2048  ;;  %p459_p11 = scmp.lt.s32.totalorder %s108_s7, %s108_s7 }
  0x2e   : > { %p452_p10 = scmp.ne.s32.totalorder %s108_s7, %s451_s16  ;;  %p460_p7 = scmp.lt.s32.totalorder %s451_s16, %s451_s16 }
  0x30   : > { %p454_p12 = pnand %p452_p10, %p440_p4  ;;  %p461_p0 = por %p460_p7, %p459_p11 }
  0x32   : > { %p455_p1 = pneg %p454_p12 }
  0x34   : > { %p462_p13 = pnand %p461_p0, %p455_p1 }
  0x36   : > { %465 = shalt.err (!%p462_p13)
}
  0x37   : > { %s554_s17 = smov 128   ;;  %s555_s18 = smov 8  }
  0x38   : > { %365 = dma.hbm_to_vmem [thread:$0]  (!%p654_p2), %s783_s1, 2048, %s108_s7, [#allocation5], %s554_s17, %s554_s17, %s555_s18  }
  0x39   : > { %p794_p3 = scmp.ne.s32.totalorder %s791_s4, 0 }
  0x3a   : > { %p795_p5 = scmp.ne.s32.totalorder (!%p794_p3), %s792_s5, 0 }
  0x3b   : > { %123 = sbr.rel (%p794_p3) target bundleno = 111 (0x6f), region = 24 }
  0x42   : > { %521 = dma.done.wait (%p795_p5), [#allocation5], 2048  }
  0x43   : > { %523 = vsyncadd (%p795_p5), [#allocation5], 4294965248  ;;  %s135_s27 = sand.u32 1, %s534_s20   ;;  %s351_s29 = sshll.u32 %s542_s22, 3  ;;  %vm223_vm0 = vcmask 1040384   ;;  %vm226_vm1 = vcmask 1041408  }
  0x44   : > { %s684_s6 = sshll.u32 %s135_s27, 4  ;;  %s142_s8 = sld [smem:[#allocation3 + %s351_s29]]  ;;  %vm229_vm2 = vcmask 1042432   ;;  %vm232_vm3 = vcmask 1043456   ;;  %vm235_vm4 = vcmask 1044480   ;;  %vm238_vm5 = vcmask 1045504  }
  0x45   : > { %s146_s9 = sadd.s32 1, %s351_s29  ;;  %s151_s10 = sadd.s32 2, %s351_s29  ;;  %vm241_vm6 = vcmask 1046528  }
  0x46   : > { %s147_s7 = sld [smem:[#allocation3 + %s146_s9]]  ;;  %s156_s11 = sadd.s32 3, %s351_s29 }
  0x47   : > { %s686_s4 = sld [smem:[#allocation3 + %s151_s10]]  ;;  %s161_s13 = sadd.s32 4, %s351_s29 }
  0x48   : > { %s688_s12 = sld [smem:[#allocation3 + %s156_s11]]  ;;  %s166_s14 = sadd.s32 5, %s351_s29 }
  0x49   : > { %s690_s5 = sld [smem:[#allocation3 + %s161_s13]]  ;;  %s171_s16 = sadd.s32 6, %s351_s29 }
  0x4a   : > { %s692_s15 = sld [smem:[#allocation3 + %s166_s14]]  ;;  %s176_s17 = sadd.s32 7, %s351_s29 }
  0x4b   : > { %s143_s18 = scalar_lea.vmem [#allocation4], %s142_s8  ;;  %s694_s0 = sld [smem:[#allocation3 + %s171_s16]] }
  0x4c   : > { %v144_v0 = vld [vmem:[%s143_s18] sm:$0x1]  ;;  %s148_s25 = scalar_lea.vmem [#allocation4], %s147_s7  ;;  %s696_s9 = sld [smem:[#allocation3 + %s176_s17]] }
  0x4d   : > { %v145_v1 = vld [vmem:[%s143_s18 + $0x40] sm:$0x1]  ;;  %s153_s10 = scalar_lea.vmem [#allocation4], %s686_s4  ;;  %s701_s8 = scalar_lea.vmem [#allocation7], %s684_s6 }
  0x4e   : > { %v149_v2 = vld [vmem:[%s148_s25] sm:$0x1]  ;;  %s158_s29 = scalar_lea.vmem [#allocation4], %s688_s12  ;;  %s262_s11 = sshll.u32 %s701_s8, 4  ;;  %s721_s11 = int_to_ptr.vmem [resolvable:$true] %s262_s11 }
  0x4f   : > { %v150_v3 = vld [vmem:[%s148_s25 + $0x40] sm:$0x1]  ;;  %v183_v5 = vrot.slane %v149_v2, 7  ;;  %s163_s13 = scalar_lea.vmem [#allocation4], %s690_s5  ;;  %s353_s12 = sshll.u32 %s542_s22, 7 }
  0x50   : > { %v154_v4 = vld [vmem:[%s153_s10] sm:$0x1]  ;;  %v184_v6 = vrot.slane %v150_v3, 7  ;;  %s168_s7 = scalar_lea.vmem [#allocation4], %s692_s15  ;;  %s729_s14 = scalar_lea.hbm %s784_s2, %s353_s12 }
  0x51   : > { %v159_v7 = vld [vmem:[%s158_s29] sm:$0x1]  ;;  %v189_v8 = vrot.slane %v154_v4, 6  ;;  %v224_v11 = vsel %vm223_vm0, %v144_v0, %v183_v5  ;;  %s173_s6 = scalar_lea.vmem [#allocation4], %s694_s0  ;;  %s736_s15 = scalar_lea.sflag [#allocation6], %s135_s27 }
  0x52   : > { %v164_v9 = vld [vmem:[%s163_s13] sm:$0x1]  ;;  %v195_v10 = vrot.slane %v159_v7, 5  ;;  %v225_v13 = vsel %vm223_vm0, %v145_v1, %v184_v6  ;;  %s178_s4 = scalar_lea.vmem [#allocation4], %s696_s9  ;;  %s466_s16 = scalar_lea.vmem %s721_s11, 256 }
  0x53   : > { %v155_v12 = vld [vmem:[%s153_s10 + $0x40] sm:$0x1]  ;;  %v201_v15 = vrot.slane %v164_v9, 4  ;;  %v227_v16 = vsel %vm226_vm1, %v224_v11, %v189_v8  ;;  %p467_p7 = scmp.ne.s32.totalorder %s721_s11, %s466_s16  ;;  %p796_p11 = scmp.ne.s32.totalorder %s789_s28, 0 }
  0x54   : > { %v169_v14 = vld [vmem:[%s168_s7] sm:$0x1]  ;;  %v190_v18 = vrot.slane %v155_v12, 6  ;;  %v230_v20 = vsel %vm229_vm2, %v227_v16, %v195_v10  ;;  %s556_s17 = smov [#allocation7]  }
  0x55   : > { %v160_v17 = vld [vmem:[%s158_s29 + $0x40] sm:$0x1]  ;;  %v207_v19 = vrot.slane %v169_v14, 3  ;;  %v233_v24 = vsel %vm232_vm3, %v230_v20, %v201_v15  ;;  %p468_p13 = pnand %p467_p7, %p796_p11  ;;  %s470_s18 = sshll.u32 %s556_s17, 4  ;;  %s471_s18 = int_to_ptr.vmem [resolvable:$false] %s470_s18 }
  0x56   : > { %v165_v21 = vld [vmem:[%s163_s13 + $0x40] sm:$0x1]  ;;  %v196_v26 = vrot.slane %v160_v17, 5  ;;  %v228_v27 = vsel %vm226_vm1, %v225_v13, %v190_v18  ;;  %s472_s0 = scalar_lea.vmem %s471_s18, 512  ;;  %p473_p2 = scmp.lt.s32.totalorder %s721_s11, %s471_s18 }
  0x57   : > { %v170_v22 = vld [vmem:[%s168_s7 + $0x40] sm:$0x1]  ;;  %v236_v30 = vsel %vm235_vm4, %v233_v24, %v207_v19  ;;  %v202_v32 = vrot.slane %v165_v21, 4  ;;  %p469_p0 = pneg %p468_p13  ;;  %p474_p4 = scmp.lt.s32.totalorder %s472_s0, %s466_s16 }
  0x58   : > { %v174_v23 = vld [vmem:[%s173_s6] sm:$0x1]  ;;  %v208_v34 = vrot.slane %v170_v22, 3  ;;  %v231_v38 = vsel %vm229_vm2, %v228_v27, %v196_v26 }
  0x59   : > { %v175_v25 = vld [vmem:[%s173_s6 + $0x40] sm:$0x1]  ;;  %v213_v29 = vrot.slane %v174_v23, 2  ;;  %v234_v40 = vsel %vm232_vm3, %v231_v38, %v202_v32  ;;  %p475_p6 = por %p474_p4, %p473_p2 }
  0x5a   : > { %v179_v28 = vld [vmem:[%s178_s4] sm:$0x1]  ;;  %v214_v35 = vrot.slane %v175_v25, 2  ;;  %v237_v41 = vsel %vm235_vm4, %v234_v40, %v208_v34 }
  0x5b   : > { %v180_v31 = vld [vmem:[%s178_s4 + $0x40] sm:$0x1]  ;;  %v219_v33 = vrot.slane %v179_v28, 1  ;;  %v239_v36 = vsel %vm238_vm5, %v236_v30, %v213_v29  ;;  %p476_p8 = pnand %p475_p6, %p469_p0 }
  0x5c   : > { %v220_v37 = vrot.slane %v180_v31, 1  ;;  %v240_v42 = vsel %vm238_vm5, %v237_v41, %v214_v35 }
  0x5d   : > { %v242_v39 = vsel %vm241_vm6, %v239_v36, %v219_v33 }
  0x5e   : > { %244 = vst [vmem:[%s701_s8] sm:$0xff] %v242_v39  ;;  %v243_v43 = vsel %vm241_vm6, %v240_v42, %v220_v37 }
  0x5f   : > { %245 = vst [vmem:[%s701_s8 + $0x8] sm:$0xff] %v243_v43 }
  0x60   : > { %479 = shalt.err (!%p476_p8)
}
  0x61   : > { %s480_s27 = scalar_lea.hbm %s729_s14, 256  ;;  %s484_s10 = scalar_lea.hbm %s784_s2, 512 }
  0x62   : > { %p481_p9 = scmp.ne.s32.totalorder %s729_s14, %s480_s27  ;;  %p485_p1 = scmp.lt.u32.totalorder %s729_s14, %s784_s2 }
  0x63   : > { %p486_p3 = scmp.lt.u32.totalorder %s484_s10, %s480_s27  ;;  %p488_p7 = scmp.lt.u32.totalorder %s480_s27, %s729_s14 }
  0x64   : > { %p482_p10 = pnand %p481_p9, %p796_p11 }
  0x65   : > { %p487_p5 = por %p486_p3, %p485_p1 }
  0x66   : > { %p483_p12 = pneg %p482_p10 }
  0x67   : > { %p489_p13 = por %p488_p7, %p487_p5 }
  0x69   : > { %p490_p0 = pnand %p489_p13, %p483_p12 }
  0x6b   : > { %493 = shalt.err (!%p490_p0)
}
  0x6c   : > { %s557_s13 = smov 128   ;;  %s558_s7 = smov 256  }
  0x6d   : > { %s559_s6 = smov 8  }
  0x6e   : > { %360 = dma.vmem_to_hbm [thread:$0]  (%p796_p11), %s721_s11, 256, %s729_s14, %s736_s15, %s557_s13, %s558_s7, %s559_s6  }
  0x6f PF: > { %p372_p2 = scmp.ge.s32.totalorder %s550_s24, 2  ;;  %s277_s4 = sand.u32 1, %s530_s19  }
  0x70   : > { %p797_p4 = scmp.ne.s32.totalorder %s790_s30, 0  ;;  %s278_s12 = scalar_lea.sflag [#allocation6], %s277_s4 }
  0x72   : > { %p367_p6 = pnand %p372_p2, %p797_p4 }
  0x74   : > { %525 = dma.done.wait (!%p367_p6), %s278_s12, 256  }
  0x75   : > { %527 = vsyncadd (!%p367_p6), %s278_s12, 4294967040  ;;  %s20_s24 = sadd.s32 1, %s550_s24   ;;  %s798_s19 = smov %s534_s20 }
  0x76   : > { %p17_p8 = scmp.ge.s32.totalorder %s20_s24, 4   ;;  %s799_s20 = smov %s538_s21 }
  0x77   : > { %s800_s21 = smov %s640_s3  ;;  %s801_s22 = smov %s546_s23 }
  0x78   : > { %s802_s23 = smov %s804_s26  ;;  %19 = sbr.rel (!%p17_p8) target bundleno = 17 (0x11), region = 70 }
  0x7f   :  { %283 = vsyncpa [#allocation5], 1 }
  0x80   :  { %285 = vsyncpa [#allocation5 + $0x1], 1 }
  0x81   :  { %286 = vsyncpa [#allocation6], 1 }
  0x82   :  { %288 = vsyncpa [#allocation6 + $0x1], 1 }

</bundles_post_ra>
